<compile_context>
chip_gen: v7x
topology: tpu7x:2x2x1
jax: 0.10.0
libtpu: 0.0.40
codegen_flags: <defaults>
</compile_context>

<pallas_src>
import functools

import jax
import jax.numpy as jnp
from jax import lax
from jax.experimental import pallas as pl
from jax.experimental.pallas import tpu as pltpu


def _round_up(x, m):
    return ((x + m - 1) // m) * m


def _supcon_kernel(*refs, use_labels, inv_temp, scale, n_valid, tm, tc):
    """Grid point (i, k): anchor row tile i, contrast column chunk k.

    Labels path refs : row_lab[tm,1], col_lab[1,n_pad], anchors[tm,dim],
                       ft[dim,n_pad], out[tm,1], 4x [tm,1] f32 scratch.
    Dense-mask path  : anchors, ft, mask[tm,tc], out, 4x scratch.
    """
    if use_labels:
        (row_lab_ref, col_lab_ref, anc_ref, ft_ref, out_ref,
         m_sc, l_sc, ps_sc, cnt_sc) = refs
    else:
        (anc_ref, ft_ref, mask_ref, out_ref,
         m_sc, l_sc, ps_sc, cnt_sc) = refs

    i = pl.program_id(0)
    k = pl.program_id(1)

    @pl.when(k == 0)
    def _init():
        m_sc[...] = jnp.full_like(m_sc, -jnp.inf)
        l_sc[...] = jnp.zeros_like(l_sc)
        ps_sc[...] = jnp.zeros_like(ps_sc)
        cnt_sc[...] = jnp.zeros_like(cnt_sc)

    col0 = pl.multiple_of(k * tc, tc)                  # 128-aligned lane offset
    ft_chunk = ft_ref[:, pl.ds(col0, tc)]              # [dim, TC] from resident F^T

    # S_chunk = A_tile @ F^T_chunk / temperature  (canonical MXU [M,K]x[K,N]).
    s = jnp.dot(anc_ref[...], ft_chunk,
                preferred_element_type=jnp.float32) * inv_temp        # [TM, TC]

    row0 = i * tm
    r = lax.broadcasted_iota(jnp.int32, (tm, tc), 0) + row0
    c = lax.broadcasted_iota(jnp.int32, (tm, tc), 1) + col0
    col_valid = c < n_valid
    lmask = jnp.logical_and(r != c, col_valid)   # torch logits_mask (+ col padding)

    # Positives mask with logits_mask pre-applied (torch: mask = mask * logits_mask).
    if use_labels:
        col_lab = col_lab_ref[:, pl.ds(col0, tc)]                      # [1, TC]
        pmask = jnp.logical_and(row_lab_ref[...] == col_lab, lmask)
        pmask = pmask.astype(jnp.float32)
    else:
        pmask = mask_ref[...]              # diag + padding already zeroed host-side

    # Online softmax over the contrast axis.
    m_prev = m_sc[...]
    m_chunk = jnp.max(jnp.where(col_valid, s, -jnp.inf), axis=1, keepdims=True)
    m_new = jnp.maximum(m_prev, m_chunk)                               # [TM, 1]

    # Denominator: sum over self-excluded valid columns of exp(s - m), rescaled.
    e = jnp.exp(jnp.where(lmask, s, -jnp.inf) - m_new)                 # masked -> 0
    l_sc[...] = jnp.exp(m_prev - m_new) * l_sc[...] + jnp.sum(e, axis=1, keepdims=True)

    # Numerator pieces need no rescaling: sum(pmask*(s-m)) = sum(pmask*s) - m*cnt.
    ps_sc[...] += jnp.sum(pmask * s, axis=1, keepdims=True)
    cnt_sc[...] += jnp.sum(pmask, axis=1, keepdims=True)
    m_sc[...] = m_new

    @pl.when(k == pl.num_programs(1) - 1)
    def _finalize():
        cnt = cnt_sc[...]
        safe_cnt = jnp.maximum(cnt, 1.0)   # padded / zero-positive rows stay finite
        mean_log_prob_pos = ps_sc[...] / safe_cnt - m_sc[...] - jnp.log(l_sc[...])
        out_ref[...] = (-scale) * mean_log_prob_pos


def supcon_loss(features, labels=None, mask=None, *, temperature=0.07,
                contrast_mode="all", base_temperature=0.07,
                tile_rows=128, tile_cols=512):
    """JAX/Pallas equivalent of SupConLoss.forward(features, labels, mask)."""
    features = jnp.asarray(features, jnp.float32)
    if features.ndim < 3:
        raise ValueError("`features` needs to be [bsz, n_views, ...]")
    if features.ndim > 3:
        features = features.reshape(features.shape[0], features.shape[1], -1)
    bsz, n_views, dim = features.shape

    if labels is not None and mask is not None:
        raise ValueError("Cannot define both `labels` and `mask`")

    use_labels = mask is None
    if use_labels:
        if labels is None:
            base_labels = jnp.arange(bsz, dtype=jnp.int32)   # SimCLR: positive = same sample
        else:
            base_labels = jnp.asarray(labels).reshape(-1).astype(jnp.int32)
            if base_labels.shape[0] != bsz:
                raise ValueError("Num of labels does not match num of features")
    else:
        base_mask = jnp.asarray(mask, jnp.float32)

    # contrast_feature = cat(unbind(features, dim=1), dim=0): view-major ordering.
    contrast_feature = jnp.transpose(features, (1, 0, 2)).reshape(n_views * bsz, dim)
    if contrast_mode == "one":
        anchor_feature = features[:, 0]
        anchor_count = 1
    elif contrast_mode == "all":
        anchor_feature = contrast_feature
        anchor_count = n_views
    else:
        raise ValueError(f"Unknown mode: {contrast_mode}")

    n_contrast = n_views * bsz
    n_anchor = anchor_count * bsz

    tm = min(_round_up(int(tile_rows), 8), _round_up(n_anchor, 8))
    tc = min(_round_up(int(tile_cols), 128), _round_up(n_contrast, 128))
    a_pad = _round_up(n_anchor, tm)
    n_pad = _round_up(n_contrast, tc)

    anchors_pad = jnp.zeros((a_pad, dim), jnp.float32).at[:n_anchor].set(anchor_feature)
    # F shipped once as F^T [dim, n_pad]: lane-dense, VMEM-resident across the grid.
    ft_pad = jnp.zeros((dim, n_pad), jnp.float32).at[:, :n_contrast].set(contrast_feature.T)

    kernel = functools.partial(
        _supcon_kernel, use_labels=use_labels,
        inv_temp=float(1.0 / temperature),
        scale=float(temperature / base_temperature),
        n_valid=int(n_contrast), tm=tm, tc=tc)

    anc_spec = pl.BlockSpec((tm, dim), lambda i, k: (i, 0))
    ft_spec = pl.BlockSpec((dim, n_pad), lambda i, k: (0, 0))          # resident, 1 DMA

    if use_labels:
        lab_tiled = jnp.tile(base_labels, n_views)                     # view-major
        col_lab = jnp.full((1, n_pad), -1, jnp.int32).at[0, :n_contrast].set(lab_tiled)
        row_vec = lab_tiled if anchor_count == n_views else base_labels
        row_lab = jnp.full((a_pad, 1), -1, jnp.int32).at[:n_anchor, 0].set(row_vec)
        in_specs = [
            pl.BlockSpec((tm, 1), lambda i, k: (i, 0)),                # anchor-row labels
            pl.BlockSpec((1, n_pad), lambda i, k: (0, 0)),             # column labels, resident
            anc_spec, ft_spec,
        ]
        operands = (row_lab, col_lab, anchors_pad, ft_pad)
        mask_bytes = 4 * (a_pad + n_pad)
    else:
        mask_rep = jnp.tile(base_mask, (anchor_count, n_views))
        # Pre-apply torch's logits_mask (self-exclusion) host-side.
        mask_rep = mask_rep * (1.0 - jnp.eye(n_anchor, n_contrast, dtype=jnp.float32))
        mask_pad = jnp.zeros((a_pad, n_pad), jnp.float32).at[:n_anchor, :n_contrast].set(mask_rep)
        in_specs = [anc_spec, ft_spec,
                    pl.BlockSpec((tm, tc), lambda i, k: (i, k))]
        operands = (anchors_pad, ft_pad, mask_pad)
        mask_bytes = 4 * a_pad * n_pad

    cost = pl.CostEstimate(
        flops=2 * a_pad * n_pad * dim,
        transcendentals=a_pad * n_pad,
        bytes_accessed=4 * (dim * n_pad + a_pad * dim + a_pad) + mask_bytes,
    )

    per_row = pl.pallas_call(
        kernel,
        out_shape=jax.ShapeDtypeStruct((a_pad, 1), jnp.float32),
        grid_spec=pltpu.PrefetchScalarGridSpec(
            num_scalar_prefetch=0,
            grid=(a_pad // tm, n_pad // tc),
            in_specs=in_specs,
            out_specs=pl.BlockSpec((tm, 1), lambda i, k: (i, 0)),
            scratch_shapes=[pltpu.VMEM((tm, 1), jnp.float32)] * 4,
        ),
        compiler_params=pltpu.CompilerParams(
            dimension_semantics=("parallel", "arbitrary"),
            vmem_limit_bytes=64 * 1024 * 1024),
        cost_estimate=cost,
    )(*operands)

    # loss.view(anchor_count, bsz).mean() == mean over all n_anchor per-row losses.
    return jnp.mean(per_row[:n_anchor, 0])


def _supcon_loss_ref(features, labels=None, mask=None, *, temperature=0.07,
                     contrast_mode="all", base_temperature=0.07):
    """Pure-JAX line-by-line port of the PyTorch SupConLoss.forward."""
    features = jnp.asarray(features, jnp.float32)
    if features.ndim > 3:
        features = features.reshape(features.shape[0], features.shape[1], -1)
    bsz, n_views = features.shape[0], features.shape[1]
    if labels is None and mask is None:
        mask = jnp.eye(bsz, dtype=jnp.float32)
    elif labels is not None:
        labels = jnp.asarray(labels).reshape(-1, 1)
        mask = (labels == labels.T).astype(jnp.float32)
    else:
        mask = jnp.asarray(mask, jnp.float32)

    contrast_count = n_views
    contrast_feature = jnp.transpose(features, (1, 0, 2)).reshape(contrast_count * bsz, -1)
    if contrast_mode == "one":
        anchor_feature = features[:, 0]
        anchor_count = 1
    else:
        anchor_feature = contrast_feature
        anchor_count = contrast_count

    adc = (anchor_feature @ contrast_feature.T) / temperature
    logits_max = jnp.max(adc, axis=1, keepdims=True)
    logits = adc - logits_max
    mask = jnp.tile(mask, (anchor_count, contrast_count))
    n_anchor = anchor_count * bsz
    logits_mask = 1.0 - jnp.eye(n_anchor, contrast_count * bsz, dtype=jnp.float32)
    mask = mask * logits_mask
    exp_logits = jnp.exp(logits) * logits_mask
    log_prob = logits - jnp.log(exp_logits.sum(1, keepdims=True))
    mean_log_prob_pos = (mask * log_prob).sum(1) / mask.sum(1)
    loss = -(temperature / base_temperature) * mean_log_prob_pos
    return loss.reshape(anchor_count, bsz).mean()


if __name__ == "__main__":
    temperature = 0.07
    base_temperature = 0.07

    key = jax.random.PRNGKey(0)
    k_feat, k_lab, k_feat2, k_lab2 = jax.random.split(key, 4)

    # --- small shapes: bsz=8, n_views=2, dim=32 -------------------------------
    B, V, D = 8, 2, 32
    feats = jax.random.normal(k_feat, (B, V, D), dtype=jnp.float32)
    feats = feats / jnp.linalg.norm(feats, axis=-1, keepdims=True)

    # Unsupervised (SimCLR) path: labels=None, mask=None.
    loss_unsup = jax.block_until_ready(
        supcon_loss(feats, temperature=temperature, base_temperature=base_temperature))
    ref_unsup = jax.block_until_ready(
        _supcon_loss_ref(feats, temperature=temperature, base_temperature=base_temperature))
    assert abs(float(loss_unsup) - float(ref_unsup)) < 1e-4, \
        f"unsup mismatch: {float(loss_unsup)} vs {float(ref_unsup)}"

    # Supervised path: labels define positives (label-vector kernel path).
    labels = jax.random.randint(k_lab, (B,), 0, 3)
    loss_sup = jax.block_until_ready(
        supcon_loss(feats, labels=labels, temperature=temperature,
                    base_temperature=base_temperature))
    ref_sup = jax.block_until_ready(
        _supcon_loss_ref(feats, labels=labels, temperature=temperature,
                         base_temperature=base_temperature))
    assert abs(float(loss_sup) - float(ref_sup)) < 1e-4, \
        f"sup mismatch: {float(loss_sup)} vs {float(ref_sup)}"

    # Explicit user-mask path (dense-mask kernel branch).
    user_mask = (labels.reshape(-1, 1) == labels.reshape(1, -1)).astype(jnp.float32)
    loss_msk = jax.block_until_ready(
        supcon_loss(feats, mask=user_mask, temperature=temperature,
                    base_temperature=base_temperature))
    assert abs(float(loss_msk) - float(ref_sup)) < 1e-4, \
        f"mask mismatch: {float(loss_msk)} vs {float(ref_sup)}"

    # Larger (still small) case that exercises multi-chunk online softmax,
    # multiple row tiles and row/column padding: grid = (3, 2).
    B2, V2, D2 = 80, 2, 32
    feats2 = jax.random.normal(k_feat2, (B2, V2, D2), dtype=jnp.float32)
    feats2 = feats2 / jnp.linalg.norm(feats2, axis=-1, keepdims=True)
    labels2 = jax.random.randint(k_lab2, (B2,), 0, 5)
    loss_big = jax.block_until_ready(
        supcon_loss(feats2, labels=labels2, temperature=temperature,
                    base_temperature=base_temperature, tile_rows=64, tile_cols=128))
    ref_big = jax.block_until_ready(
        _supcon_loss_ref(feats2, labels=labels2, temperature=temperature,
                         base_temperature=base_temperature))
    assert abs(float(loss_big) - float(ref_big)) < 1e-4, \
        f"chunked mismatch: {float(loss_big)} vs {float(ref_big)}"

    print("KERNEL_OK")
</pallas_src>

<mosaic_0001>
module attributes {stable_mosaic.version = 11 : i64} {
  func.func @_supcon_kernel(%arg0: i32, %arg1: i32, %arg2: memref<16x1xi32, #tpu.memory_space<vmem>>, %arg3: memref<1x128xi32, #tpu.memory_space<vmem>>, %arg4: memref<16x32xf32, #tpu.memory_space<vmem>>, %arg5: memref<32x128xf32, #tpu.memory_space<vmem>>, %arg6: memref<16x1xf32, #tpu.memory_space<vmem>>, %arg7: memref<16x1xf32, #tpu.memory_space<vmem>>, %arg8: memref<16x1xf32, #tpu.memory_space<vmem>>, %arg9: memref<16x1xf32, #tpu.memory_space<vmem>>, %arg10: memref<16x1xf32, #tpu.memory_space<vmem>>) attributes {dimension_semantics = [#tpu.dimension_semantics<parallel>, #tpu.dimension_semantics<arbitrary>], iteration_bounds = array<i64: 1, 1>, scalar_prefetch = 0 : i64, scratch_operands = 4 : i64, tpu.core_type = #tpu.core_type<tc>, window_params = [{transform_indices = @transform_0, window_bounds = array<i64: 16, 1>}, {pipeline_mode = #tpu.pipeline_mode<synchronous>, transform_indices = @transform_1, window_bounds = array<i64: 1, 128>}, {transform_indices = @transform_2, window_bounds = array<i64: 16, 32>}, {pipeline_mode = #tpu.pipeline_mode<synchronous>, transform_indices = @transform_3, window_bounds = array<i64: 32, 128>}, {transform_indices = @transform_4, window_bounds = array<i64: 16, 1>}]} {
    %c0_i32 = arith.constant 0 : i32
    %0 = arith.cmpi eq, %arg1, %c0_i32 : i32
    %1 = arith.extui %0 : i1 to i32
    %c0_i32_0 = arith.constant 0 : i32
    %2 = arith.cmpi ne, %1, %c0_i32_0 : i32
    scf.if %2 {
      %cst_32 = arith.constant 0xFF800000 : f32
      %65 = vector.broadcast %cst_32 : f32 to vector<16x1xf32>
      %c0_33 = arith.constant 0 : index
      %c0_34 = arith.constant 0 : index
      %66 = vector.load %arg7[%c0_33, %c0_34] : memref<16x1xf32, #tpu.memory_space<vmem>>, vector<16x1xf32>
      tpu.vector_store %arg7[%c0_33, %c0_34], %65 {strides = array<i32>} : memref<16x1xf32, #tpu.memory_space<vmem>>, vector<16x1xf32>,
      %cst_35 = arith.constant 0.000000e+00 : f32
      %67 = vector.broadcast %cst_35 : f32 to vector<16x1xf32>
      %c0_36 = arith.constant 0 : index
      %c0_37 = arith.constant 0 : index
      %68 = vector.load %arg8[%c0_36, %c0_37] : memref<16x1xf32, #tpu.memory_space<vmem>>, vector<16x1xf32>
      tpu.vector_store %arg8[%c0_36, %c0_37], %67 {strides = array<i32>} : memref<16x1xf32, #tpu.memory_space<vmem>>, vector<16x1xf32>,
      %cst_38 = arith.constant 0.000000e+00 : f32
      %69 = vector.broadcast %cst_38 : f32 to vector<16x1xf32>
      %c0_39 = arith.constant 0 : index
      %c0_40 = arith.constant 0 : index
      %70 = vector.load %arg9[%c0_39, %c0_40] : memref<16x1xf32, #tpu.memory_space<vmem>>, vector<16x1xf32>
      tpu.vector_store %arg9[%c0_39, %c0_40], %69 {strides = array<i32>} : memref<16x1xf32, #tpu.memory_space<vmem>>, vector<16x1xf32>,
      %cst_41 = arith.constant 0.000000e+00 : f32
      %71 = vector.broadcast %cst_41 : f32 to vector<16x1xf32>
      %c0_42 = arith.constant 0 : index
      %c0_43 = arith.constant 0 : index
      %72 = vector.load %arg10[%c0_42, %c0_43] : memref<16x1xf32, #tpu.memory_space<vmem>>, vector<16x1xf32>
      tpu.vector_store %arg10[%c0_42, %c0_43], %71 {strides = array<i32>} : memref<16x1xf32, #tpu.memory_space<vmem>>, vector<16x1xf32>,
    } else {
    }
    %c128_i32 = arith.constant 128 : i32
    %3 = arith.muli %arg1, %c128_i32 : i32
    %4 = tpu.assume_multiple %3, 128 : i32
    %c0 = arith.constant 0 : index
    %5 = arith.index_cast %4 : i32 to index
    %6 = vector.load %arg5[%c0, %5] : memref<32x128xf32, #tpu.memory_space<vmem>>, vector<32x128xf32>
    %c0_1 = arith.constant 0 : index
    %c0_2 = arith.constant 0 : index
    %7 = vector.load %arg4[%c0_1, %c0_2] : memref<16x32xf32, #tpu.memory_space<vmem>>, vector<16x32xf32>
    %cst = arith.constant dense<0.000000e+00> : vector<16x128xf32>
    %8 = tpu.matmul %7, %6, %cst {dimension_numbers = #tpu.dot_dimension_numbers<[1], [0], [0], [1], [0, 0, 1, 1], [], []>} : vector<16x32xf32>, vector<32x128xf32>, vector<16x128xf32> -> vector<16x128xf32>
    %cst_3 = arith.constant 14.2857141 : f32
    %9 = vector.broadcast %cst_3 : f32 to vector<16x128xf32>
    %10 = arith.mulf %8, %9 : vector<16x128xf32>
    %c16_i32 = arith.constant 16 : i32
    %11 = arith.muli %arg0, %c16_i32 : i32
    %12 = tpu.iota {dimensions = array<i32: 0>} : vector<16x128xi32>
    %13 = vector.broadcast %11 : i32 to vector<16x128xi32>
    %14 = arith.addi %12, %13 : vector<16x128xi32>
    %15 = tpu.iota {dimensions = array<i32: 1>} : vector<16x128xi32>
    %16 = vector.broadcast %4 : i32 to vector<16x128xi32>
    %17 = arith.addi %15, %16 : vector<16x128xi32>
    %c16_i32_4 = arith.constant 16 : i32
    %18 = vector.broadcast %c16_i32_4 : i32 to vector<16x128xi32>
    %19 = arith.cmpi slt, %17, %18 : vector<16x128xi32>
    %20 = arith.cmpi ne, %14, %17 : vector<16x128xi32>
    %21 = arith.andi %20, %19 : vector<16x128xi1>
    %c0_5 = arith.constant 0 : index
    %22 = arith.index_cast %4 : i32 to index
    %23 = vector.load %arg3[%c0_5, %22] : memref<1x128xi32, #tpu.memory_space<vmem>>, vector<1x128xi32>
    %c0_6 = arith.constant 0 : index
    %c0_7 = arith.constant 0 : index
    %24 = vector.load %arg2[%c0_6, %c0_7] : memref<16x1xi32, #tpu.memory_space<vmem>>, vector<16x1xi32>
    %25 = vector.broadcast %24 : vector<16x1xi32> to vector<16x128xi32>
    %26 = vector.broadcast %23 : vector<1x128xi32> to vector<16x128xi32>
    %27 = arith.cmpi eq, %25, %26 : vector<16x128xi32>
    %28 = arith.andi %27, %21 : vector<16x128xi1>
    %29 = arith.extui %28 : vector<16x128xi1> to vector<16x128xi32>
    %30 = arith.sitofp %29 : vector<16x128xi32> to vector<16x128xf32>
    %c0_8 = arith.constant 0 : index
    %c0_9 = arith.constant 0 : index
    %31 = vector.load %arg7[%c0_8, %c0_9] : memref<16x1xf32, #tpu.memory_space<vmem>>, vector<16x1xf32>
    %cst_10 = arith.constant 0xFF800000 : f32
    %32 = vector.broadcast %cst_10 : f32 to vector<16x128xf32>
    %33 = arith.select %19, %10, %32 : vector<16x128xi1>, vector<16x128xf32>
    %cst_11 = arith.constant dense<0xFF800000> : vector<16xf32>
    %34 = vector.multi_reduction <maximumf>, %33, %cst_11 [1] : vector<16x128xf32> to vector<16xf32>
    %35 = vector.shape_cast %34 : vector<16xf32> to vector<16x1xf32>
    %36 = arith.maximumf %31, %35 : vector<16x1xf32>
    %cst_12 = arith.constant 0xFF800000 : f32
    %37 = vector.broadcast %cst_12 : f32 to vector<16x128xf32>
    %38 = arith.select %21, %10, %37 : vector<16x128xi1>, vector<16x128xf32>
    %39 = vector.broadcast %36 : vector<16x1xf32> to vector<16x128xf32>
    %40 = arith.subf %38, %39 : vector<16x128xf32>
    %41 = math.exp %40 : vector<16x128xf32>
    %42 = arith.subf %31, %36 : vector<16x1xf32>
    %43 = math.exp %42 : vector<16x1xf32>
    %c0_13 = arith.constant 0 : index
    %c0_14 = arith.constant 0 : index
    %44 = vector.load %arg8[%c0_13, %c0_14] : memref<16x1xf32, #tpu.memory_space<vmem>>, vector<16x1xf32>
    %45 = arith.mulf %43, %44 : vector<16x1xf32>
    %cst_15 = arith.constant dense<0.000000e+00> : vector<16xf32>
    %46 = vector.multi_reduction <add>, %41, %cst_15 [1] : vector<16x128xf32> to vector<16xf32>
    %47 = vector.shape_cast %46 : vector<16xf32> to vector<16x1xf32>
    %48 = arith.addf %45, %47 : vector<16x1xf32>
    %c0_16 = arith.constant 0 : index
    %c0_17 = arith.constant 0 : index
    %49 = vector.load %arg8[%c0_16, %c0_17] : memref<16x1xf32, #tpu.memory_space<vmem>>, vector<16x1xf32>
    tpu.vector_store %arg8[%c0_16, %c0_17], %48 {strides = array<i32>} : memref<16x1xf32, #tpu.memory_space<vmem>>, vector<16x1xf32>,
    %c0_18 = arith.constant 0 : index
    %c0_19 = arith.constant 0 : index
    %50 = vector.load %arg9[%c0_18, %c0_19] : memref<16x1xf32, #tpu.memory_space<vmem>>, vector<16x1xf32>
    %51 = arith.mulf %30, %10 : vector<16x128xf32>
    %cst_20 = arith.constant dense<0.000000e+00> : vector<16xf32>
    %52 = vector.multi_reduction <add>, %51, %cst_20 [1] : vector<16x128xf32> to vector<16xf32>
    %53 = vector.shape_cast %52 : vector<16xf32> to vector<16x1xf32>
    %54 = arith.addf %50, %53 : vector<16x1xf32>
    %c0_21 = arith.constant 0 : index
    %c0_22 = arith.constant 0 : index
    %55 = vector.load %arg9[%c0_21, %c0_22] : memref<16x1xf32, #tpu.memory_space<vmem>>, vector<16x1xf32>
    tpu.vector_store %arg9[%c0_21, %c0_22], %54 {strides = array<i32>} : memref<16x1xf32, #tpu.memory_space<vmem>>, vector<16x1xf32>,
    %c0_23 = arith.constant 0 : index
    %c0_24 = arith.constant 0 : index
    %56 = vector.load %arg10[%c0_23, %c0_24] : memref<16x1xf32, #tpu.memory_space<vmem>>, vector<16x1xf32>
    %cst_25 = arith.constant dense<0.000000e+00> : vector<16xf32>
    %57 = vector.multi_reduction <add>, %30, %cst_25 [1] : vector<16x128xf32> to vector<16xf32>
    %58 = vector.shape_cast %57 : vector<16xf32> to vector<16x1xf32>
    %59 = arith.addf %56, %58 : vector<16x1xf32>
    %c0_26 = arith.constant 0 : index
    %c0_27 = arith.constant 0 : index
    %60 = vector.load %arg10[%c0_26, %c0_27] : memref<16x1xf32, #tpu.memory_space<vmem>>, vector<16x1xf32>
    tpu.vector_store %arg10[%c0_26, %c0_27], %59 {strides = array<i32>} : memref<16x1xf32, #tpu.memory_space<vmem>>, vector<16x1xf32>,
    %c0_28 = arith.constant 0 : index
    %c0_29 = arith.constant 0 : index
    %61 = vector.load %arg7[%c0_28, %c0_29] : memref<16x1xf32, #tpu.memory_space<vmem>>, vector<16x1xf32>
    tpu.vector_store %arg7[%c0_28, %c0_29], %36 {strides = array<i32>} : memref<16x1xf32, #tpu.memory_space<vmem>>, vector<16x1xf32>,
    %c0_i32_30 = arith.constant 0 : i32
    %62 = arith.cmpi eq, %arg1, %c0_i32_30 : i32
    %63 = arith.extui %62 : i1 to i32
    %c0_i32_31 = arith.constant 0 : i32
    %64 = arith.cmpi ne, %63, %c0_i32_31 : i32
    scf.if %64 {
      %c0_32 = arith.constant 0 : index
      %c0_33 = arith.constant 0 : index
      %65 = vector.load %arg10[%c0_32, %c0_33] : memref<16x1xf32, #tpu.memory_space<vmem>>, vector<16x1xf32>
      %cst_34 = arith.constant 1.000000e+00 : f32
      %66 = vector.broadcast %cst_34 : f32 to vector<16x1xf32>
      %67 = arith.maximumf %65, %66 : vector<16x1xf32>
      %c0_35 = arith.constant 0 : index
      %c0_36 = arith.constant 0 : index
      %68 = vector.load %arg9[%c0_35, %c0_36] : memref<16x1xf32, #tpu.memory_space<vmem>>, vector<16x1xf32>
      %69 = arith.divf %68, %67 : vector<16x1xf32>
      %c0_37 = arith.constant 0 : index
      %c0_38 = arith.constant 0 : index
      %70 = vector.load %arg7[%c0_37, %c0_38] : memref<16x1xf32, #tpu.memory_space<vmem>>, vector<16x1xf32>
      %71 = arith.subf %69, %70 : vector<16x1xf32>
      %c0_39 = arith.constant 0 : index
      %c0_40 = arith.constant 0 : index
      %72 = vector.load %arg8[%c0_39, %c0_40] : memref<16x1xf32, #tpu.memory_space<vmem>>, vector<16x1xf32>
      %73 = math.log %72 : vector<16x1xf32>
      %74 = arith.subf %71, %73 : vector<16x1xf32>
      %cst_41 = arith.constant -1.000000e+00 : f32
      %75 = vector.broadcast %cst_41 : f32 to vector<16x1xf32>
      %76 = arith.mulf %75, %74 : vector<16x1xf32>
      %c0_42 = arith.constant 0 : index
      %c0_43 = arith.constant 0 : index
      %77 = vector.load %arg6[%c0_42, %c0_43] : memref<16x1xf32, #tpu.memory_space<vmem>>, vector<16x1xf32>
      tpu.vector_store %arg6[%c0_42, %c0_43], %76 {strides = array<i32>} : memref<16x1xf32, #tpu.memory_space<vmem>>, vector<16x1xf32>,
    } else {
    }
    return
  }
  func.func @transform_0(%arg0: i32, %arg1: i32) -> (i32, i32) {
    %c0_i32 = arith.constant 0 : i32
    %c0_i32_0 = arith.constant 0 : i32
    return %arg0, %c0_i32 : i32, i32
  }
  func.func @transform_1(%arg0: i32, %arg1: i32) -> (i32, i32) {
    %c0_i32 = arith.constant 0 : i32
    %c0_i32_0 = arith.constant 0 : i32
    %c0_i32_1 = arith.constant 0 : i32
    return %c0_i32, %c0_i32_0 : i32, i32
  }
  func.func @transform_2(%arg0: i32, %arg1: i32) -> (i32, i32) {
    %c0_i32 = arith.constant 0 : i32
    %c0_i32_0 = arith.constant 0 : i32
    return %arg0, %c0_i32 : i32, i32
  }
  func.func @transform_3(%arg0: i32, %arg1: i32) -> (i32, i32) {
    %c0_i32 = arith.constant 0 : i32
    %c0_i32_0 = arith.constant 0 : i32
    %c0_i32_1 = arith.constant 0 : i32
    return %c0_i32, %c0_i32_0 : i32, i32
  }
  func.func @transform_4(%arg0: i32, %arg1: i32) -> (i32, i32) {
    %c0_i32 = arith.constant 0 : i32
    %c0_i32_0 = arith.constant 0 : i32
    return %arg0, %c0_i32 : i32, i32
  }
}

</mosaic_0001>

<bundles_post_ra>
// kernel: tpu_custom_call.1
= control target key start
LH: loop header
LB: loop body
LE: loop exit
PB: predicated region body
PF: predicated region fallthrough
CT: control target
= control target key end

     0   :  { %9 = vsyncpa [#allocation7], 0  ;;  %s658_s0 = inlined_call_operand.hbm [shape: s32[16,1], index: 0, kind: input, shape index: {}]   ;;  %s659_s1 = inlined_call_operand.hbm [shape: s32[1,128], index: 1, kind: input, shape index: {}]   ;;  %s660_s2 = inlined_call_operand.hbm [shape: f32[16,32], index: 2, kind: input, shape index: {}]   ;;  %s661_s3 = inlined_call_operand.hbm [shape: f32[32,128], index: 3, kind: input, shape index: {}]   ;;  %s662_s4 = inlined_call_operand.hbm [shape: f32[16,1], index: 4, kind: output, shape index: {}]  }
   0x1   :  { %10 = vsyncpa [#allocation10], 0 }
   0x2   :  { %11 = vsyncpa [#allocation13], 0 }
   0x3   :  { %12 = vsyncpa [#allocation8], 0  ;;  %s513_s15 = smov [#allocation9]   ;;  %s514_s17 = smov [#allocation6]  }
   0x4   :  { %s31_s16 = sshll.u32 %s513_s15, 4  ;;  %s18_s18 = sshll.u32 %s514_s17, 4  ;;  %s32_s16 = int_to_ptr.vmem [resolvable:$true] %s31_s16  ;;  %s548_s18 = int_to_ptr.vmem [resolvable:$true] %s18_s18 }
   0x5   :  { %s395_s21 = scalar_lea.hbm %s659_s1, 16 }
   0x6   :  { %p396_p0 = scmp.ne.s32.totalorder %s659_s1, %s395_s21  ;;  %p399_p1 = scmp.lt.u32.totalorder %s395_s21, %s659_s1 }
   0x8   :  { %p401_p2 = pnand %p399_p1, %p396_p0 }
   0xa   :  { %404 = shalt.err (!%p401_p2)
}
   0xb   :  { %s405_s26 = scalar_lea.vmem %s32_s16, 16  ;;  %s409_s27 = scalar_lea.vmem %s32_s16, 32 }
   0xc   :  { %p406_p3 = scmp.ne.s32.totalorder %s32_s16, %s405_s26  ;;  %p410_p4 = scmp.lt.s32.totalorder %s32_s16, %s32_s16 }
   0xd   :  { %p411_p5 = scmp.lt.s32.totalorder %s409_s27, %s405_s26 }
   0xf   :  { %p412_p6 = por %p411_p5, %p410_p4 }
  0x11   :  { %p413_p7 = pnand %p412_p6, %p406_p3 }
  0x13   :  { %416 = shalt.err (!%p413_p7)
}
  0x14   :  { %34 = dma.hbm_to_vmem [thread:$0]  %s659_s1, 16, %s32_s16, [#allocation10]  }
  0x15   :  { %s417_s6 = scalar_lea.hbm %s658_s0, 256 }
  0x16   :  { %p418_p8 = scmp.ne.s32.totalorder %s658_s0, %s417_s6  ;;  %p421_p9 = scmp.lt.u32.totalorder %s417_s6, %s658_s0 }
  0x18   :  { %p423_p10 = pnand %p421_p9, %p418_p8 }
  0x1a   :  { %426 = shalt.err (!%p423_p10)
}
  0x1b   :  { %s427_s11 = scalar_lea.vmem %s548_s18, 256  ;;  %p432_p12 = scmp.lt.s32.totalorder %s548_s18, %s548_s18 }
  0x1c   :  { %p428_p11 = scmp.ne.s32.totalorder %s548_s18, %s427_s11  ;;  %p433_p13 = scmp.lt.s32.totalorder %s427_s11, %s427_s11 }
  0x1e   :  { %p434_p0 = por %p433_p13, %p432_p12 }
  0x20   :  { %p435_p1 = pnand %p434_p0, %p428_p11 }
  0x22   :  { %438 = shalt.err (!%p435_p1)
}
  0x23   :  { %s515_s1 = smov 128   ;;  %s516_s12 = smov 8  }
  0x24   :  { %24 = dma.hbm_to_vmem [thread:$0]  %s658_s0, 256, %s548_s18, [#allocation7], %s515_s1, %s515_s1, %s516_s12  }
  0x25   :  { %s517_s15 = smov [#allocation11]   ;;  %s518_s17 = smov [#allocation12]  }
  0x26   :  { %s40_s16 = sshll.u32 %s517_s15, 4  ;;  %s52_s19 = sshll.u32 %s518_s17, 4  ;;  %s41_s16 = int_to_ptr.vmem [resolvable:$true] %s40_s16  ;;  %s582_s19 = int_to_ptr.vmem [resolvable:$true] %s52_s19 }
  0x27   :  { %s439_s22 = scalar_lea.hbm %s660_s2, 256 }
  0x28   :  { %p440_p2 = scmp.ne.s32.totalorder %s660_s2, %s439_s22  ;;  %p443_p3 = scmp.lt.u32.totalorder %s439_s22, %s660_s2 }
  0x2a   :  { %p445_p4 = pnand %p443_p3, %p440_p2 }
  0x2c   :  { %448 = shalt.err (!%p445_p4)
}
  0x2d   :  { %s449_s0 = scalar_lea.vmem %s41_s16, 256  ;;  %p454_p6 = scmp.lt.s32.totalorder %s41_s16, %s41_s16 }
  0x2e   :  { %p450_p5 = scmp.ne.s32.totalorder %s41_s16, %s449_s0  ;;  %p455_p7 = scmp.lt.s32.totalorder %s449_s0, %s449_s0 }
  0x30   :  { %p456_p8 = por %p455_p7, %p454_p6 }
  0x32   :  { %p457_p9 = pnand %p456_p8, %p450_p5 }
  0x34   :  { %460 = shalt.err (!%p457_p9)
}
  0x35   :  { %46 = dma.hbm_to_vmem [thread:$0]  %s660_s2, 256, %s41_s16, [#allocation10], %s515_s1, %s515_s1, %s516_s12  }
  0x36   :  { %s461_s30 = scalar_lea.hbm %s661_s3, 512 }
  0x37   :  { %p462_p10 = scmp.ne.s32.totalorder %s661_s3, %s461_s30  ;;  %p465_p11 = scmp.lt.u32.totalorder %s461_s30, %s661_s3 }
  0x39   :  { %p467_p12 = pnand %p465_p11, %p462_p10 }
  0x3b   :  { %470 = shalt.err (!%p467_p12)
}
  0x3c   :  { %s471_s9 = scalar_lea.vmem %s582_s19, 512  ;;  %p476_p0 = scmp.lt.s32.totalorder %s582_s19, %s582_s19 }
  0x3d   :  { %p472_p13 = scmp.ne.s32.totalorder %s582_s19, %s471_s9  ;;  %p477_p1 = scmp.lt.s32.totalorder %s471_s9, %s471_s9 }
  0x3f   :  { %p478_p2 = por %p477_p1, %p476_p0 }
  0x41   :  { %p479_p3 = pnand %p478_p2, %p472_p13 }
  0x43   :  { %482 = shalt.err (!%p479_p3)
}
  0x44   :  { %58 = dma.hbm_to_vmem [thread:$0]  %s661_s3, 512, %s582_s19, [#allocation13], %s515_s1, %s515_s1, %s516_s12  }
  0x45   :  { %505 = dma.done.wait [#allocation7], 256  }
  0x46   :  { %506 = vsyncadd [#allocation7], 4294967040 }
  0x47   :  { %507 = dma.done.wait [#allocation10], 272  }
  0x48   :  { %508 = vsyncadd [#allocation10], 4294967024 }
  0x49   :  { %509 = dma.done.wait [#allocation13], 512  }
  0x4a   :  { %510 = vsyncadd [#allocation13], 4294966784  ;;  %vm94_vm0 = vcmask 261120   ;;  %v88_v0 = vld [vmem:[#allocation12] sm:$0xff]  ;;  %v89_v1 = vld [vmem:[#allocation12 + $0x8] sm:$0xff]  ;;  %v179_v8 = vlaneseq  ;;  %v519_v12 = vmov 0  }
  0x4b   :  { %v90_v2 = vld [vmem:[#allocation12 + $0x10] sm:$0xff]  ;;  %v359_v3 = vpack.c.bf16 %v89_v1, %v88_v0  ;;  %v91_v4 = vld [vmem:[#allocation12 + $0x18] sm:$0xff]  ;;  %378 = vset.pattern.permute.xlu0 %v519_v12  ;;  %377 = vset.pattern.permute.xlu1 %v519_v12  ;;  %vm75_vm3 = vcmask 7168   ;;  %v520_v13 = vmov -inf   ;;  %v521_v21 = vmov 0.0   ;;  %v197_v30 = vld [vmem:[#allocation6 + $0x8] sm:$0xff] }
  0x4c   :  { %v92_v5 = vld [vmem:[#allocation11] sm:$0xff]  ;;  %v363_v6 = vpack.c.bf16 %v91_v4, %v90_v2  ;;  %v93_v7 = vld [vmem:[#allocation11 + $0x8] sm:$0xff]  ;;  %v180_v9 = vshrl.u32 %v179_v8, 7  ;;  %v186_v10 = vand.u32 127, %v179_v8  ;;  %76 = vst.msk [vmem:[#allocation2] sm:$0xff] %vm75_vm3, %v520_v13  ;;  %77 = vst.msk [vmem:[#allocation2 + $0x8] sm:$0xff] %vm75_vm3, %v520_v13 }
  0x4d   :  { %356 = vmatprep.mubr.msk.f32.mxu0 %vm94_vm0, %v92_v5  ;;  %360 = vmatprep.subr.bf16.mxu0 %v359_v3  ;;  %v196_v20 = vld [vmem:[#allocation6] sm:$0xff]  ;;  %78 = vst.msk [vmem:[#allocation3] sm:$0xff] %vm75_vm3, %v521_v21  ;;  %79 = vst.msk [vmem:[#allocation3 + $0x8] sm:$0xff] %vm75_vm3, %v521_v21  ;;  %v339_v31 = vld [vmem:[#allocation9] ss:$0 sm:$0xff]  ;;  %s522_s3 = smov [#allocation14]  }
  0x4e   :  { %362 = vmatpush3.bf16.msra.mxu0 %v359_v3  ;;  %v181_v11 = vadd.s32 8, %v180_v9  ;;  %vm190_vm2 = vcmp.ne.s32.totalorder %v180_v9, %v186_v10  ;;  %vm189_vm4 = vcmp.lt.s32.totalorder %v186_v10, 16  ;;  %80 = vst.msk [vmem:[#allocation4] sm:$0xff] %vm75_vm3, %v521_v21  ;;  %81 = vst.msk [vmem:[#allocation4 + $0x8] sm:$0xff] %vm75_vm3, %v521_v21  ;;  %s321_s11 = sshll.u32 %s522_s3, 4  ;;  %s322_s11 = int_to_ptr.vmem [resolvable:$true] %s321_s11 }
  0x4f   :  { %364 = vmatprep.subr.bf16.mxu0 %v363_v6  ;;  %82 = vst.msk [vmem:[#allocation5] sm:$0xff] %vm75_vm3, %v521_v21  ;;  %83 = vst.msk [vmem:[#allocation5 + $0x8] sm:$0xff] %vm75_vm3, %v521_v21  ;;  %s483_s13 = scalar_lea.vmem %s322_s11, 256  ;;  %p488_p5 = scmp.lt.s32.totalorder %s322_s11, %s322_s11 }
  0x50   :  { %vm191_vm1 = vcmp.ne.s32.totalorder %v181_v11, %v186_v10  ;;  %vm192_vm6 = vmand %vm190_vm2, %vm189_vm4  ;;  %p484_p4 = scmp.ne.s32.totalorder %s322_s11, %s483_s13  ;;  %p489_p6 = scmp.lt.s32.totalorder %s483_s13, %s483_s13 }
  0x51   :  { %vm193_vm8 = vmand %vm191_vm1, %vm189_vm4 }
  0x52   :  { %366 = vmatpush3.bf16.msra.mxu0 %v363_v6  ;;  %p490_p7 = por %p489_p6, %p488_p5 }
  0x53   :  { %v216_v22 = vld [vmem:[#allocation2] sm:$0xff]  ;;  %v217_v25 = vld [vmem:[#allocation2 + $0x8] sm:$0xff] }
  0x54   :  { %v250_v56 = vld [vmem:[#allocation3] sm:$0xff]  ;;  %v251_v62 = vld [vmem:[#allocation3 + $0x8] sm:$0xff]  ;;  %p491_p8 = pnand %p490_p7, %p484_p4 }
  0x55   :  { %357 = vmatmul.mubr.msk.f32.vlgmr.msra.gmra.mrb[0].mxu0 %vm94_vm0, %v93_v7  ;;  %v263_v4 = vld [vmem:[#allocation4] sm:$0xff]  ;;  %v264_v9 = vld [vmem:[#allocation4 + $0x8] sm:$0xff] }
  0x56   :  { %v275_v48 = vld [vmem:[#allocation5] sm:$0xff]  ;;  %v276_v53 = vld [vmem:[#allocation5 + $0x8] sm:$0xff] }
 0x128   :  { %v358_v14 = vpop.f32.mrb[0].mxu0 }
 0x129   :  { %v167_v15 = vpop.f32.mrb[1].mxu0  ;;  %v177_v17 = vmul.f32 14.285714, %v358_v14 }
 0x12a   :  { %v176_v16 = vmul.f32 14.285714, %v167_v15 }
 0x12b   :  { %v219_v19 = vsel %vm189_vm4, %v177_v17, -inf  ;;  %v227_v38 = vsel %vm193_vm8, %v177_v17, -inf }
 0x12c   :  { %v218_v18 = vsel %vm189_vm4, %v176_v16, -inf  ;;  %v226_v34 = vsel %vm192_vm6, %v176_v16, -inf }
 0x12d   :  { %220 = vmax.xlane.f32.xlu0 %v218_v18 }
 0x131   :  { %222 = vmax.xlane.f32.xlu0 %v219_v19 }
 0x147   :  { %199 = vperm.xlu0 %378, %v196_v20  }
 0x1ba   :  { %v221_v23 = vpop.xlane.xlu0 %220 }
 0x1bb   :  { %v224_v24 = vmax.f32 %v216_v22, %v221_v23 }
 0x1bd   :  { %v244_v26 = vsub.f32 %v216_v22, %v224_v24  ;;  %285 = vst.msk [vmem:[#allocation2] sm:$0xff] %vm75_vm3, %v224_v24  ;;  %230 = vperm.xlu1 %377, %v224_v24  }
 0x1be   :  { %v223_v27 = vpop.xlane.xlu0 %222 }
 0x1bf   :  { %v225_v28 = vmax.f32 %v217_v25, %v223_v27  ;;  %v246_v51 = vmul.f32 1.442695, %v244_v26 }
 0x1c1   :  { %v245_v29 = vsub.f32 %v217_v25, %v225_v28  ;;  %286 = vst.msk [vmem:[#allocation2 + $0x8] sm:$0xff] %vm75_vm3, %v225_v28  ;;  %235 = vperm.xlu1 %377, %v225_v28  }
 0x1c3   :  { %v248_v52 = vmul.f32 1.442695, %v245_v29 }
 0x1c5   :  { %202 = vperm.xlu1 %377, %v197_v30  }
 0x1c6   :  { %v200_v32 = vpop.permute.xlu0 %199 }
 0x1c7   :  { %vm208_vm5 = vcmp.eq.s32.totalorder %v200_v32, %v339_v31 }
 0x1c8   :  { %vm210_vm7 = vmand %vm208_vm5, %vm192_vm6  ;;  %v301_v24 = vld [vmem:[#allocation2 + $0x8] sm:$0xff] }
 0x1c9   :  { %v340_v33 = vsel %vm210_vm7, 1.0, %v521_v21 }
 0x1ca   :  { %v265_v46 = vmul.f32 %v340_v33, %v176_v16 }
 0x1e9   :  { %277 = vadd.xlane.f32.xlu1 %v340_v33 }
 0x23c   :  { %v231_v35 = vpop.permute.xlu1 %230 }
 0x23d   :  { %v238_v36 = vsub.f32 %v226_v34, %v231_v35 }
 0x23f   :  { %v240_v37 = vmul.f32 1.442695, %v238_v36 }
 0x240   :  { %v236_v39 = vpop.permute.xlu1 %235 }
 0x241   :  { %379 = vpow2.f32 %v240_v37  ;;  %v239_v40 = vsub.f32 %v227_v38, %v236_v39 }
 0x243   :  { %v242_v41 = vmul.f32 1.442695, %v239_v40 }
 0x244   :  { %v203_v42 = vpop.permute.xlu1 %202 }
 0x245   :  { %381 = vpow2.f32 %v242_v41  ;;  %vm209_vm9 = vcmp.eq.s32.totalorder %v203_v42, %v339_v31 }
 0x246   :  { %vm211_vm10 = vmand %vm209_vm9, %vm193_vm8  ;;  %383 = vpow2.f32 %v246_v51 }
 0x247   :  { %v341_v43 = vsel %vm211_vm10, 1.0, %v521_v21  ;;  %385 = vpow2.f32 %v248_v52 }
 0x248   :  { %279 = vadd.xlane.f32.xlu1 %v341_v43  ;;  %v266_v47 = vmul.f32 %v341_v43, %v177_v17  ;;  %v300_v17 = vld [vmem:[#allocation2] sm:$0xff] }
 0x24b   :  { %v380_v44 = vpop.eup %379 }
 0x24c   :  { %254 = vadd.xlane.f32.xlu0 %v380_v44 }
 0x24f   :  { %v382_v45 = vpop.eup %381 }
 0x250   :  { %256 = vadd.xlane.f32.xlu1 %v382_v45  ;;  %v384_v54 = vpop.eup %383 }
 0x251   :  { %v252_v58 = vmul.f32 %v384_v54, %v250_v56  ;;  %v386_v60 = vpop.eup %385 }
 0x252   :  { %v253_v1 = vmul.f32 %v386_v60, %v251_v62 }
 0x254   :  { %267 = vadd.xlane.f32.xlu1 %v265_v46 }
 0x258   :  { %269 = vadd.xlane.f32.xlu1 %v266_v47 }
 0x276   :  { %v278_v49 = vpop.xlane.xlu1 %277 }
 0x277   :  { %v281_v50 = vadd.f32 %v278_v49, %v275_v48 }
 0x279   :  { %283 = vst.msk [vmem:[#allocation5] sm:$0xff] %vm75_vm3, %v281_v50 }
 0x280   :  { %v290_v59 = vld [vmem:[#allocation5] sm:$0xff] }
 0x281   :  { %v292_v0 = vmax.f32 %v290_v59, 1.0 }
 0x283   :  { %387 = vrcp.f32 %v292_v0 }
 0x28d   :  { %v388_v14 = vpop.eup %387 }
 0x2d5   :  { %v280_v55 = vpop.xlane.xlu1 %279 }
 0x2d6   :  { %v282_v57 = vadd.f32 %v280_v55, %v276_v53 }
 0x2d8   :  { %284 = vst.msk [vmem:[#allocation5 + $0x8] sm:$0xff] %vm75_vm3, %v282_v57 }
 0x2d9   :  { %v255_v61 = vpop.xlane.xlu0 %254 }
 0x2da   :  { %v258_v63 = vadd.f32 %v255_v61, %v252_v58 }
 0x2dc   :  { %261 = vst.msk [vmem:[#allocation3] sm:$0xff] %vm75_vm3, %v258_v63 }
 0x2dd   :  { %v257_v2 = vpop.xlane.xlu1 %256 }
 0x2de   :  { %v259_v3 = vadd.f32 %v257_v2, %v253_v1 }
 0x2df   :  { %v291_v5 = vld [vmem:[#allocation5 + $0x8] sm:$0xff] }
 0x2e0   :  { %262 = vst.msk [vmem:[#allocation3 + $0x8] sm:$0xff] %vm75_vm3, %v259_v3  ;;  %v293_v7 = vmax.f32 %v291_v5, 1.0 }
 0x2e1   :  { %v268_v6 = vpop.xlane.xlu1 %267 }
 0x2e2   :  { %v271_v8 = vadd.f32 %v268_v6, %v263_v4 }
 0x2e3   :  { %v304_v10 = vld [vmem:[#allocation3] sm:$0xff] }
 0x2e4   :  { %273 = vst.msk [vmem:[#allocation4] sm:$0xff] %vm75_vm3, %v271_v8  ;;  %389 = vlog2.f32 %v304_v10 }
 0x2e5   :  { %v270_v11 = vpop.xlane.xlu1 %269  ;;  %391 = vrcp.f32 %v293_v7 }
 0x2e6   :  { %v272_v12 = vadd.f32 %v270_v11, %v264_v9 }
 0x2e7   :  { %v305_v13 = vld [vmem:[#allocation3 + $0x8] sm:$0xff] }
 0x2e8   :  { %274 = vst.msk [vmem:[#allocation4 + $0x8] sm:$0xff] %vm75_vm3, %v272_v12  ;;  %393 = vlog2.f32 %v305_v13 }
 0x2eb   :  { %v294_v15 = vld [vmem:[#allocation4] sm:$0xff] }
 0x2ec   :  { %v297_v16 = vmul.f32 %v388_v14, %v294_v15 }
 0x2ee   :  { %v390_v18 = vpop.eup %389  ;;  %v302_v19 = vsub.f32 %v297_v16, %v300_v17 }
 0x2ef   :  { %v392_v20 = vpop.eup %391  ;;  %v295_v21 = vld [vmem:[#allocation4 + $0x8] sm:$0xff]  ;;  %v307_v22 = vmul.f32 0.6931472, %v390_v18 }
 0x2f0   :  { %v299_v23 = vmul.f32 %v392_v20, %v295_v21 }
 0x2f1   :  { %v310_v25 = vsub.f32 %v302_v19, %v307_v22 }
 0x2f2   :  { %v394_v26 = vpop.eup %393  ;;  %v303_v27 = vsub.f32 %v299_v23, %v301_v24 }
 0x2f3   :  { %v309_v28 = vmul.f32 0.6931472, %v394_v26  ;;  %v312_v29 = vmul.f32 -1.0, %v310_v25 }
 0x2f5   :  { %v311_v30 = vsub.f32 %v303_v27, %v309_v28  ;;  %314 = vst.msk [vmem:[#allocation14] sm:$0xff] %vm75_vm3, %v312_v29 }
 0x2f7   :  { %v313_v31 = vmul.f32 -1.0, %v311_v30 }
 0x2f9   :  { %315 = vst.msk [vmem:[#allocation14 + $0x8] sm:$0xff] %vm75_vm3, %v313_v31 }
 0x2fa   :  { %494 = shalt.err (!%p491_p8)
}
 0x2fb   :  { %s495_s16 = scalar_lea.hbm %s662_s4, 256 }
 0x2fc   :  { %p496_p9 = scmp.ne.s32.totalorder %s662_s4, %s495_s16  ;;  %p499_p10 = scmp.lt.u32.totalorder %s495_s16, %s662_s4 }
 0x2fe   :  { %p501_p11 = pnand %p499_p10, %p496_p9 }
 0x300   :  { %504 = shalt.err (!%p501_p11)
}
 0x301   :  { %327 = dma.vmem_to_hbm [thread:$0]  %s322_s11, 256, %s662_s4, [#allocation8], %s515_s1, %s515_s1, %s516_s12  }
 0x302   :  { %511 = dma.done.wait [#allocation8], 256  }
 0x303   :  { %512 = vsyncadd [#allocation8], 4294967040 }
 0x304   :  { %331 = vsyncpa [#allocation7], 1 }
 0x305   :  { %332 = vsyncpa [#allocation10], 1 }
 0x306   :  { %333 = vsyncpa [#allocation13], 1 }
 0x307   :  { %334 = vsyncpa [#allocation8], 1 }

</bundles_post_ra>
